<compile_context>
chip_gen: v7x
topology: tpu7x:2x2x1
jax: 0.10.0
libtpu: 0.0.40
codegen_flags: <defaults>
</compile_context>

<pallas_src>
import jax
import jax.numpy as jnp
from jax.experimental import pallas as pl
from jax.experimental.pallas import tpu as pltpu

_LANE = 128
_MAX_BLK_ROWS = 8192      # 8192 * 128 * 4B = 4 MiB per input per buffer


def _device_kind():
    try:
        return jax.devices()[0].device_kind.lower()
    except Exception:
        return ""


def mfe_loss(inputs, target, *, max_blk_rows=None, force_ncores=None):
    """Scalar MFE loss (fpe + fne) computed with a Pallas TPU kernel."""
    x = jnp.reshape(inputs, (-1,))
    t = jnp.reshape(target, (-1,))
    n = x.shape[0]
    if n == 0:
        return jnp.zeros((), jnp.float32)

    # Lane pad only when n is not a multiple of 128 (needed for the 2-D
    # (rows, 128) view); padded elements are excluded by the in-kernel mask.
    rem = n % _LANE
    if rem:
        x = jnp.pad(x, (0, _LANE - rem))
        t = jnp.pad(t, (0, _LANE - rem))
    rows = x.shape[0] // _LANE
    x2 = x.reshape(rows, _LANE)
    t2 = t.reshape(rows, _LANE)

    kind = _device_kind()
    is_v7 = "v7" in kind
    # v7x: 2 TensorCores, 64 MiB VMEM/TC -> cap scoped VMEM at 48 MiB.
    # v5e/v6e: single TensorCore, 128 MiB VMEM -> raise the 16/32 MiB default
    # so the 8192-row blocks (2 inputs x 2 buffers x 4 MiB = 16 MiB) fit.
    ncores = 2 if is_v7 else 1
    vmem_limit = (48 << 20) if is_v7 else (64 << 20)
    if force_ncores is not None:
        ncores = int(force_ncores)

    blk_max = _MAX_BLK_ROWS if max_blk_rows is None else int(max_blk_rows)
    # Full extent for small inputs (single grid step), else a large
    # multiple-of-8 block well past the mem-bound roofline knee.
    blk_rows = rows if rows <= blk_max else blk_max
    nblk = -(-rows // blk_rows)           # number of real blocks
    if nblk < 2:
        ncores = 1                        # never pay a duplicate block for 1 block
    npc = -(-nblk // ncores)              # blocks per core

    full_rows = n // _LANE                # rows where all 128 lanes are valid
    last_valid = rem if rem else _LANE    # valid lanes in the last real row
    rows_m1 = rows - 1

    def kernel(x_ref, t_ref, o_ref):
        if ncores == 2:
            c = pl.program_id(0)          # megacore axis (v7x)
            i = pl.program_id(1)          # sequential reduction axis
            blk_idx = c * npc + i
        else:
            i = pl.program_id(0)
            blk_idx = i

        @pl.when(i == 0)
        def _init():
            o_ref[...] = jnp.zeros_like(o_ref)

        x_blk = x_ref[...].astype(jnp.float32)
        t_blk = t_ref[...]

        if t_blk.dtype == jnp.bool_:
            raw_neg = jnp.logical_not(t_blk)
            raw_pos = t_blk
        else:
            raw_neg = t_blk == jnp.zeros((), t_blk.dtype)
            raw_pos = t_blk == jnp.ones((), t_blk.dtype)

        def accumulate(negm, posm):
            negf = negm.astype(jnp.float32)
            posf = posm.astype(jnp.float32)
            # Single shared square: err = x where t==0, x-1 where t==1.
            err = x_blk - posf
            sq = err * err
            # select (NOT mask*sq) so garbage in out-of-bounds rows can never
            # poison the sums via 0*inf / 0*nan.
            fp = jnp.where(negm, sq, 0.0)
            fn = jnp.where(posm, sq, 0.0)
            partial = jnp.concatenate(
                [jnp.sum(fp, axis=0, keepdims=True),
                 jnp.sum(fn, axis=0, keepdims=True),
                 jnp.sum(negf, axis=0, keepdims=True),
                 jnp.sum(posf, axis=0, keepdims=True)],
                axis=0)                               # (4, 128), lane-dense
            o_ref[...] += partial[None]               # one add-store per step

        # Fast path: block lies entirely inside the fully-valid rows — no
        # iota / mask work. Only the ragged last block and the clamped
        # duplicate block (v7x, nblk odd) take the masked path; the duplicate
        # block is fully masked out there.
        is_full = (blk_idx + 1) * blk_rows <= full_rows

        @pl.when(is_full)
        def _fast():
            accumulate(raw_neg, raw_pos)

        @pl.when(jnp.logical_not(is_full))
        def _masked():
            shape = x_blk.shape
            row_g = (blk_idx * blk_rows
                     + jax.lax.broadcasted_iota(jnp.int32, shape, 0))
            lane = jax.lax.broadcasted_iota(jnp.int32, shape, 1)
            valid = jnp.logical_or(
                row_g < rows_m1,
                jnp.logical_and(row_g == rows_m1, lane < last_valid))
            accumulate(jnp.logical_and(raw_neg, valid),
                       jnp.logical_and(raw_pos, valid))

    if ncores == 2:
        # Clamp so the (at most one) padding block re-reads a valid block;
        # its contribution is zeroed by the in-kernel mask.
        in_map = lambda c, i: (jnp.minimum(c * npc + i, nblk - 1), 0)
        out_map = lambda c, i: (c, 0, 0)
        grid = (ncores, npc)
        # TODO(synk): if an xprof profile on v7x shows one TensorCore idle,
        # switch this axis to pltpu.CORE_PARALLEL (or pl.core_map); "parallel"
        # is the known-good spelling used here.
        semantics = ("parallel", "arbitrary")
    else:
        in_map = lambda i: (i, 0)
        out_map = lambda i: (0, 0, 0)
        grid = (npc,)
        semantics = ("arbitrary",)

    spec_kwargs = {}
    if is_v7 and npc >= 3:
        # v7x: deeper buffering to hide DMA issue latency; 3 bufs x 2 inputs
        # x 4 MiB = 24 MiB, under the 48 MiB scoped limit.
        spec_kwargs["pipeline_mode"] = pl.Buffered(3)

    in_specs = [pl.BlockSpec((blk_rows, _LANE), in_map, **spec_kwargs),
                pl.BlockSpec((blk_rows, _LANE), in_map, **spec_kwargs)]
    out_specs = pl.BlockSpec((1, 4, _LANE), out_map)

    out_bytes = ncores * 4 * _LANE * 4
    acc = pl.pallas_call(
        kernel,
        out_shape=jax.ShapeDtypeStruct((ncores, 4, _LANE), jnp.float32),
        grid=grid,
        in_specs=in_specs,
        out_specs=out_specs,
        compiler_params=pltpu.CompilerParams(
            dimension_semantics=semantics,
            vmem_limit_bytes=vmem_limit),
        cost_estimate=pl.CostEstimate(
            flops=8 * n,
            transcendentals=0,
            bytes_accessed=int(x2.size * x2.dtype.itemsize
                               + t2.size * t2.dtype.itemsize
                               + out_bytes)),
    )(x2, t2)

    sums = jnp.sum(acc, axis=(0, 2))      # [fp_sum, fn_sum, n_neg, n_pos]
    fpe = jnp.where(sums[2] > 0, sums[0] / sums[2], 0.0)
    fne = jnp.where(sums[3] > 0, sums[1] / sums[3], 0.0)
    return fpe + fne


def _mfe_loss_ref(inputs, target):
    """Pure-JAX reference for validation."""
    x = jnp.reshape(inputs, (-1,)).astype(jnp.float32)
    t = jnp.reshape(target, (-1,)).astype(jnp.float32)
    neg = (t == 0.0)
    pos = (t == 1.0)
    n_neg = jnp.sum(neg.astype(jnp.float32))
    n_pos = jnp.sum(pos.astype(jnp.float32))
    fp = jnp.sum(jnp.where(neg, x * x, 0.0))
    fn = jnp.sum(jnp.where(pos, (x - 1.0) ** 2, 0.0))
    fpe = jnp.where(n_neg > 0, fp / n_neg, 0.0)
    fne = jnp.where(n_pos > 0, fn / n_pos, 0.0)
    return fpe + fne


if __name__ == "__main__":
    key = jax.random.PRNGKey(0)
    k1, k2, k3, k4, k5, k6 = jax.random.split(key, 6)

    # NCHW segmentation-style prediction: [2, 4, 16, 16] (fast full-block path).
    inputs = jax.random.uniform(k1, (2, 4, 16, 16), dtype=jnp.float32)
    target = jax.random.bernoulli(k2, p=0.3, shape=(2, 4, 16, 16)).astype(jnp.float32)
    loss = jax.block_until_ready(jax.jit(mfe_loss)(inputs, target))
    ref = _mfe_loss_ref(inputs, target)
    assert jnp.allclose(loss, ref, rtol=1e-5, atol=1e-6), (loss, ref)

    # Ragged size (n % 128 != 0): exercises the in-kernel masked tail path.
    inputs2 = jax.random.uniform(k3, (3, 5, 21), dtype=jnp.float32)
    target2 = jax.random.bernoulli(k4, p=0.5, shape=(3, 5, 21)).astype(jnp.float32)
    loss2 = jax.block_until_ready(jax.jit(mfe_loss)(inputs2, target2))
    ref2 = _mfe_loss_ref(inputs2, target2)
    assert jnp.allclose(loss2, ref2, rtol=1e-5, atol=1e-6), (loss2, ref2)

    # Multi-block grid via a small block-size override: exercises the fast
    # full-block path, the masked ragged last block, and (forced 2-core grid)
    # the clamped duplicate-block path — all on tiny data.
    inputs3 = jax.random.uniform(k5, (2, 9, 140), dtype=jnp.float32)
    target3 = jax.random.bernoulli(k6, p=0.4, shape=(2, 9, 140)).astype(jnp.float32)
    ref3 = _mfe_loss_ref(inputs3, target3)
    loss3 = jax.block_until_ready(mfe_loss(inputs3, target3, max_blk_rows=8))
    assert jnp.allclose(loss3, ref3, rtol=1e-5, atol=1e-6), (loss3, ref3)
    loss3b = jax.block_until_ready(
        mfe_loss(inputs3, target3, max_blk_rows=8, force_ncores=2))
    assert jnp.allclose(loss3b, ref3, rtol=1e-5, atol=1e-6), (loss3b, ref3)

    print("KERNEL_OK")
</pallas_src>

<mosaic_0001>
module attributes {stable_mosaic.version = 11 : i64} {
  func.func @kernel(%arg0: i32, %arg1: memref<16x128xf32, #tpu.memory_space<vmem>>, %arg2: memref<16x128xf32, #tpu.memory_space<vmem>>, %arg3: memref<1x4x128xf32, #tpu.memory_space<vmem>>) attributes {dimension_semantics = [#tpu.dimension_semantics<arbitrary>], iteration_bounds = array<i64: 1>, scalar_prefetch = 0 : i64, scratch_operands = 0 : i64, tpu.core_type = #tpu.core_type<tc>, window_params = [{transform_indices = @transform_0, window_bounds = array<i64: 16, 128>}, {transform_indices = @transform_1, window_bounds = array<i64: 16, 128>}, {pipeline_mode = #tpu.pipeline_mode<synchronous>, transform_indices = @transform_2, window_bounds = array<i64: 1, 4, 128>}]} {
    %c0_i32 = arith.constant 0 : i32
    %0 = arith.cmpi eq, %arg0, %c0_i32 : i32
    %1 = arith.extui %0 : i1 to i32
    %c0_i32_0 = arith.constant 0 : i32
    %2 = arith.cmpi ne, %1, %c0_i32_0 : i32
    scf.if %2 {
      %cst_8 = arith.constant 0.000000e+00 : f32
      %17 = vector.broadcast %cst_8 : f32 to vector<1x4x128xf32>
      %c0_9 = arith.constant 0 : index
      %c0_10 = arith.constant 0 : index
      %c0_11 = arith.constant 0 : index
      %18 = vector.load %arg3[%c0_9, %c0_10, %c0_11] : memref<1x4x128xf32, #tpu.memory_space<vmem>>, vector<1x4x128xf32>
      tpu.vector_store %arg3[%c0_9, %c0_10, %c0_11], %17 {strides = array<i32>} : memref<1x4x128xf32, #tpu.memory_space<vmem>>, vector<1x4x128xf32>,
    } else {
    }
    %c0 = arith.constant 0 : index
    %c0_1 = arith.constant 0 : index
    %3 = vector.load %arg1[%c0, %c0_1] : memref<16x128xf32, #tpu.memory_space<vmem>>, vector<16x128xf32>
    %c0_2 = arith.constant 0 : index
    %c0_3 = arith.constant 0 : index
    %4 = vector.load %arg2[%c0_2, %c0_3] : memref<16x128xf32, #tpu.memory_space<vmem>>, vector<16x128xf32>
    %cst = arith.constant 0.000000e+00 : f32
    %5 = vector.broadcast %cst : f32 to vector<16x128xf32>
    %6 = arith.cmpf oeq, %4, %5 : vector<16x128xf32>
    %cst_4 = arith.constant 1.000000e+00 : f32
    %7 = vector.broadcast %cst_4 : f32 to vector<16x128xf32>
    %8 = arith.cmpf oeq, %4, %7 : vector<16x128xf32>
    %c1_i32 = arith.constant 1 : i32
    %9 = arith.addi %arg0, %c1_i32 : i32
    %c16_i32 = arith.constant 16 : i32
    %10 = arith.muli %9, %c16_i32 : i32
    %c16_i32_5 = arith.constant 16 : i32
    %11 = arith.cmpi sle, %10, %c16_i32_5 : i32
    %12 = arith.extui %11 : i1 to i32
    %c0_i32_6 = arith.constant 0 : i32
    %13 = arith.cmpi ne, %12, %c0_i32_6 : i32
    scf.if %13 {
      %17 = arith.extui %6 : vector<16x128xi1> to vector<16x128xi32>
      %18 = arith.sitofp %17 : vector<16x128xi32> to vector<16x128xf32>
      %19 = arith.extui %8 : vector<16x128xi1> to vector<16x128xi32>
      %20 = arith.sitofp %19 : vector<16x128xi32> to vector<16x128xf32>
      %21 = arith.subf %3, %20 : vector<16x128xf32>
      %22 = arith.mulf %21, %21 : vector<16x128xf32>
      %cst_8 = arith.constant 0.000000e+00 : f32
      %23 = vector.broadcast %cst_8 : f32 to vector<16x128xf32>
      %24 = arith.select %6, %22, %23 : vector<16x128xi1>, vector<16x128xf32>
      %cst_9 = arith.constant 0.000000e+00 : f32
      %25 = vector.broadcast %cst_9 : f32 to vector<16x128xf32>
      %26 = arith.select %8, %22, %25 : vector<16x128xi1>, vector<16x128xf32>
      %cst_10 = arith.constant dense<0.000000e+00> : vector<128xf32>
      %27 = vector.multi_reduction <add>, %24, %cst_10 [0] : vector<16x128xf32> to vector<128xf32>
      %28 = vector.shape_cast %27 : vector<128xf32> to vector<1x128xf32>
      %cst_11 = arith.constant dense<0.000000e+00> : vector<128xf32>
      %29 = vector.multi_reduction <add>, %26, %cst_11 [0] : vector<16x128xf32> to vector<128xf32>
      %30 = vector.shape_cast %29 : vector<128xf32> to vector<1x128xf32>
      %cst_12 = arith.constant dense<0.000000e+00> : vector<128xf32>
      %31 = vector.multi_reduction <add>, %18, %cst_12 [0] : vector<16x128xf32> to vector<128xf32>
      %32 = vector.shape_cast %31 : vector<128xf32> to vector<1x128xf32>
      %cst_13 = arith.constant dense<0.000000e+00> : vector<128xf32>
      %33 = vector.multi_reduction <add>, %20, %cst_13 [0] : vector<16x128xf32> to vector<128xf32>
      %34 = vector.shape_cast %33 : vector<128xf32> to vector<1x128xf32>
      %35 = tpu.concatenate %28, %30, %32, %34 in 0 : vector<1x128xf32>, vector<1x128xf32>, vector<1x128xf32>, vector<1x128xf32> -> vector<4x128xf32>
      %c0_14 = arith.constant 0 : index
      %c0_15 = arith.constant 0 : index
      %c0_16 = arith.constant 0 : index
      %36 = vector.load %arg3[%c0_14, %c0_15, %c0_16] : memref<1x4x128xf32, #tpu.memory_space<vmem>>, vector<1x4x128xf32>
      %37 = vector.shape_cast %35 : vector<4x128xf32> to vector<1x4x128xf32>
      %38 = arith.addf %36, %37 : vector<1x4x128xf32>
      %c0_17 = arith.constant 0 : index
      %c0_18 = arith.constant 0 : index
      %c0_19 = arith.constant 0 : index
      %39 = vector.load %arg3[%c0_17, %c0_18, %c0_19] : memref<1x4x128xf32, #tpu.memory_space<vmem>>, vector<1x4x128xf32>
      tpu.vector_store %arg3[%c0_17, %c0_18, %c0_19], %38 {strides = array<i32>} : memref<1x4x128xf32, #tpu.memory_space<vmem>>, vector<1x4x128xf32>,
    } else {
    }
    %true = arith.constant true
    %14 = arith.xori %11, %true : i1
    %15 = arith.extui %14 : i1 to i32
    %c0_i32_7 = arith.constant 0 : i32
    %16 = arith.cmpi ne, %15, %c0_i32_7 : i32
    scf.if %16 {
      %c16_i32_8 = arith.constant 16 : i32
      %17 = arith.muli %arg0, %c16_i32_8 : i32
      %18 = tpu.iota {dimensions = array<i32: 0>} : vector<16x128xi32>
      %19 = vector.broadcast %17 : i32 to vector<16x128xi32>
      %20 = arith.addi %19, %18 : vector<16x128xi32>
      %21 = tpu.iota {dimensions = array<i32: 1>} : vector<16x128xi32>
      %c15_i32 = arith.constant 15 : i32
      %22 = vector.broadcast %c15_i32 : i32 to vector<16x128xi32>
      %23 = arith.cmpi slt, %20, %22 : vector<16x128xi32>
      %c15_i32_9 = arith.constant 15 : i32
      %24 = vector.broadcast %c15_i32_9 : i32 to vector<16x128xi32>
      %25 = arith.cmpi eq, %20, %24 : vector<16x128xi32>
      %c128_i32 = arith.constant 128 : i32
      %26 = vector.broadcast %c128_i32 : i32 to vector<16x128xi32>
      %27 = arith.cmpi slt, %21, %26 : vector<16x128xi32>
      %28 = arith.andi %25, %27 : vector<16x128xi1>
      %29 = arith.ori %23, %28 : vector<16x128xi1>
      %30 = arith.andi %6, %29 : vector<16x128xi1>
      %31 = arith.andi %8, %29 : vector<16x128xi1>
      %32 = arith.extui %30 : vector<16x128xi1> to vector<16x128xi32>
      %33 = arith.sitofp %32 : vector<16x128xi32> to vector<16x128xf32>
      %34 = arith.extui %31 : vector<16x128xi1> to vector<16x128xi32>
      %35 = arith.sitofp %34 : vector<16x128xi32> to vector<16x128xf32>
      %36 = arith.subf %3, %35 : vector<16x128xf32>
      %37 = arith.mulf %36, %36 : vector<16x128xf32>
      %cst_10 = arith.constant 0.000000e+00 : f32
      %38 = vector.broadcast %cst_10 : f32 to vector<16x128xf32>
      %39 = arith.select %30, %37, %38 : vector<16x128xi1>, vector<16x128xf32>
      %cst_11 = arith.constant 0.000000e+00 : f32
      %40 = vector.broadcast %cst_11 : f32 to vector<16x128xf32>
      %41 = arith.select %31, %37, %40 : vector<16x128xi1>, vector<16x128xf32>
      %cst_12 = arith.constant dense<0.000000e+00> : vector<128xf32>
      %42 = vector.multi_reduction <add>, %39, %cst_12 [0] : vector<16x128xf32> to vector<128xf32>
      %43 = vector.shape_cast %42 : vector<128xf32> to vector<1x128xf32>
      %cst_13 = arith.constant dense<0.000000e+00> : vector<128xf32>
      %44 = vector.multi_reduction <add>, %41, %cst_13 [0] : vector<16x128xf32> to vector<128xf32>
      %45 = vector.shape_cast %44 : vector<128xf32> to vector<1x128xf32>
      %cst_14 = arith.constant dense<0.000000e+00> : vector<128xf32>
      %46 = vector.multi_reduction <add>, %33, %cst_14 [0] : vector<16x128xf32> to vector<128xf32>
      %47 = vector.shape_cast %46 : vector<128xf32> to vector<1x128xf32>
      %cst_15 = arith.constant dense<0.000000e+00> : vector<128xf32>
      %48 = vector.multi_reduction <add>, %35, %cst_15 [0] : vector<16x128xf32> to vector<128xf32>
      %49 = vector.shape_cast %48 : vector<128xf32> to vector<1x128xf32>
      %50 = tpu.concatenate %43, %45, %47, %49 in 0 : vector<1x128xf32>, vector<1x128xf32>, vector<1x128xf32>, vector<1x128xf32> -> vector<4x128xf32>
      %c0_16 = arith.constant 0 : index
      %c0_17 = arith.constant 0 : index
      %c0_18 = arith.constant 0 : index
      %51 = vector.load %arg3[%c0_16, %c0_17, %c0_18] : memref<1x4x128xf32, #tpu.memory_space<vmem>>, vector<1x4x128xf32>
      %52 = vector.shape_cast %50 : vector<4x128xf32> to vector<1x4x128xf32>
      %53 = arith.addf %51, %52 : vector<1x4x128xf32>
      %c0_19 = arith.constant 0 : index
      %c0_20 = arith.constant 0 : index
      %c0_21 = arith.constant 0 : index
      %54 = vector.load %arg3[%c0_19, %c0_20, %c0_21] : memref<1x4x128xf32, #tpu.memory_space<vmem>>, vector<1x4x128xf32>
      tpu.vector_store %arg3[%c0_19, %c0_20, %c0_21], %53 {strides = array<i32>} : memref<1x4x128xf32, #tpu.memory_space<vmem>>, vector<1x4x128xf32>,
    } else {
    }
    return
  }
  func.func @transform_0(%arg0: i32) -> (i32, i32) {
    %c0_i32 = arith.constant 0 : i32
    %c0_i32_0 = arith.constant 0 : i32
    return %arg0, %c0_i32 : i32, i32
  }
  func.func @transform_1(%arg0: i32) -> (i32, i32) {
    %c0_i32 = arith.constant 0 : i32
    %c0_i32_0 = arith.constant 0 : i32
    return %arg0, %c0_i32 : i32, i32
  }
  func.func @transform_2(%arg0: i32) -> (i32, i32, i32) {
    %c0_i32 = arith.constant 0 : i32
    %c0_i32_0 = arith.constant 0 : i32
    %c0_i32_1 = arith.constant 0 : i32
    %c0_i32_2 = arith.constant 0 : i32
    return %c0_i32, %c0_i32_0, %c0_i32_1 : i32, i32, i32
  }
}

</mosaic_0001>

<bundles_post_ra>
// kernel: mfe_loss.1
= control target key start
LH: loop header
LB: loop body
LE: loop exit
PB: predicated region body
PF: predicated region fallthrough
CT: control target
= control target key end

     0   :  { %7 = vsyncpa [#allocation3], 0  ;;  %s358_s0 = inlined_call_operand.hbm [shape: f32[16,128], index: 0, kind: input, shape index: {}]   ;;  %s359_s1 = inlined_call_operand.hbm [shape: f32[16,128], index: 1, kind: input, shape index: {}]   ;;  %s360_s2 = inlined_call_operand.hbm [shape: f32[1,4,128], index: 2, kind: output, shape index: {}]  }
   0x1   :  { %8 = vsyncpa [#allocation6], 0 }
   0x2   :  { %9 = vsyncpa [#allocation4], 0  ;;  %s293_s9 = smov [#allocation2]   ;;  %s221_s13 = scalar_lea.hbm %s358_s0, 256 }
   0x3   :  { %s15_s10 = sshll.u32 %s293_s9, 4  ;;  %p222_p0 = scmp.ne.s32.totalorder %s358_s0, %s221_s13  ;;  %s16_s10 = int_to_ptr.vmem [resolvable:$true] %s15_s10 }
   0x4   :  { %p225_p1 = scmp.lt.u32.totalorder %s221_s13, %s358_s0 }
   0x6   :  { %p227_p2 = pnand %p225_p1, %p222_p0 }
   0x8   :  { %230 = shalt.err (!%p227_p2)
}
   0x9   :  { %s231_s18 = scalar_lea.vmem %s16_s10, 256  ;;  %p236_p4 = scmp.lt.s32.totalorder %s16_s10, %s16_s10 }
   0xa   :  { %p232_p3 = scmp.ne.s32.totalorder %s16_s10, %s231_s18  ;;  %p237_p5 = scmp.lt.s32.totalorder %s231_s18, %s231_s18 }
   0xc   :  { %p238_p6 = por %p237_p5, %p236_p4 }
   0xe   :  { %p239_p7 = pnand %p238_p6, %p232_p3 }
  0x10   :  { %242 = shalt.err (!%p239_p7)
}
  0x11   :  { %s294_s19 = smov 128   ;;  %s295_s20 = smov 8  }
  0x12   :  { %21 = dma.hbm_to_vmem [thread:$0]  %s358_s0, 256, %s16_s10, [#allocation3], %s294_s19, %s294_s19, %s295_s20  }
  0x13   :  { %s296_s23 = smov [#allocation5]   ;;  %s243_s27 = scalar_lea.hbm %s359_s1, 256 }
  0x14   :  { %s27_s24 = sshll.u32 %s296_s23, 4  ;;  %p244_p8 = scmp.ne.s32.totalorder %s359_s1, %s243_s27  ;;  %s28_s24 = int_to_ptr.vmem [resolvable:$true] %s27_s24 }
  0x15   :  { %p247_p9 = scmp.lt.u32.totalorder %s243_s27, %s359_s1 }
  0x17   :  { %p249_p10 = pnand %p247_p9, %p244_p8 }
  0x19   :  { %252 = shalt.err (!%p249_p10)
}
  0x1a   :  { %s253_s4 = scalar_lea.vmem %s28_s24, 256  ;;  %p258_p12 = scmp.lt.s32.totalorder %s28_s24, %s28_s24 }
  0x1b   :  { %p254_p11 = scmp.ne.s32.totalorder %s28_s24, %s253_s4  ;;  %p259_p13 = scmp.lt.s32.totalorder %s253_s4, %s253_s4 }
  0x1d   :  { %p260_p0 = por %p259_p13, %p258_p12 }
  0x1f   :  { %p261_p1 = pnand %p260_p0, %p254_p11 }
  0x21   :  { %264 = shalt.err (!%p261_p1)
}
  0x22   :  { %33 = dma.hbm_to_vmem [thread:$0]  %s359_s1, 256, %s28_s24, [#allocation6], %s294_s19, %s294_s19, %s295_s20  }
  0x23   :  { %287 = dma.done.wait [#allocation3], 256  }
  0x24   :  { %288 = vsyncadd [#allocation3], 4294967040 }
  0x25   :  { %289 = dma.done.wait [#allocation6], 256  }
  0x26   :  { %290 = vsyncadd [#allocation6], 4294967040  ;;  %v297_v0 = vmov 0.0   ;;  %v45_v1 = vld [vmem:[#allocation2] sm:$0xff]  ;;  %v47_v2 = vld [vmem:[#allocation5] sm:$0xff]  ;;  %vm103_vm4 = vcmask 1040384  }
  0x27   :  { %44 = vst [vmem:[#allocation7] sm:$0xf] %v297_v0  ;;  %v46_v3 = vld [vmem:[#allocation2 + $0x8] sm:$0xff]  ;;  %v48_v4 = vld [vmem:[#allocation5 + $0x8] sm:$0xff]  ;;  %vm49_vm0 = vcmp.eq.f32.partialorder %v47_v2, 0.0  ;;  %vm51_vm1 = vcmp.eq.f32.partialorder %v47_v2, 1.0 }
  0x28   :  { %vm50_vm2 = vcmp.eq.f32.partialorder %v48_v4, 0.0  ;;  %vm52_vm3 = vcmp.eq.f32.partialorder %v48_v4, 1.0  ;;  %v207_v5 = vsel %vm49_vm0, 1.0, %v297_v0  ;;  %v209_v6 = vsel %vm51_vm1, 1.0, %v297_v0  ;;  %s298_s1 = smov [#allocation7]  }
  0x29   :  { %v208_v7 = vsel %vm50_vm2, 1.0, %v297_v0  ;;  %v210_v8 = vsel %vm52_vm3, 1.0, %v297_v0  ;;  %v67_v9 = vsub.f32 %v45_v1, %v209_v6  ;;  %vm105_vm5 = vcmask 1041408   ;;  %s197_s6 = sshll.u32 %s298_s1, 4  ;;  %s198_s6 = int_to_ptr.vmem [resolvable:$true] %s197_s6 }
  0x2a   :  { %v68_v10 = vsub.f32 %v46_v3, %v210_v8  ;;  %v89_v11 = vadd.f32 %v208_v7, %v207_v5  ;;  %v96_v12 = vadd.f32 %v210_v8, %v209_v6  ;;  %vm107_vm6 = vcmask 1042432   ;;  %s265_s7 = scalar_lea.vmem %s198_s6, 64  ;;  %p270_p3 = scmp.lt.s32.totalorder %s198_s6, %s198_s6 }
  0x2b   :  { %v69_v13 = vmul.f32 %v67_v9, %v67_v9  ;;  %p266_p2 = scmp.ne.s32.totalorder %s198_s6, %s265_s7  ;;  %p271_p4 = scmp.lt.s32.totalorder %s265_s7, %s265_s7 }
  0x2c   :  { %v70_v14 = vmul.f32 %v68_v10, %v68_v10  ;;  %v90_v15 = vrot.slane %v89_v11, 4  ;;  %v97_v16 = vrot.slane %v96_v12, 4 }
  0x2d   :  { %v71_v17 = vsel %vm49_vm0, %v69_v13, 0.0  ;;  %v73_v18 = vsel %vm51_vm1, %v69_v13, 0.0  ;;  %p272_p5 = por %p271_p4, %p270_p3 }
  0x2e   :  { %v72_v19 = vsel %vm50_vm2, %v70_v14, 0.0  ;;  %v74_v20 = vsel %vm52_vm3, %v70_v14, 0.0  ;;  %v91_v21 = vadd.f32 %v90_v15, %v89_v11  ;;  %v98_v22 = vadd.f32 %v97_v16, %v96_v12  ;;  %v109_v46 = vld [vmem:[#allocation7] sm:$0xf] }
  0x2f   :  { %v75_v23 = vadd.f32 %v72_v19, %v71_v17  ;;  %v82_v24 = vadd.f32 %v74_v20, %v73_v18  ;;  %p273_p6 = pnand %p272_p5, %p266_p2 }
  0x30   :  { %v92_v25 = vrot.slane %v91_v21, 2  ;;  %v99_v26 = vrot.slane %v98_v22, 2 }
  0x31   :  { %v76_v27 = vrot.slane %v75_v23, 4  ;;  %v83_v28 = vrot.slane %v82_v24, 4 }
  0x32   :  { %v93_v29 = vadd.f32 %v92_v25, %v91_v21  ;;  %v100_v32 = vadd.f32 %v99_v26, %v98_v22 }
  0x33   :  { %v77_v30 = vadd.f32 %v76_v27, %v75_v23  ;;  %v84_v31 = vadd.f32 %v83_v28, %v82_v24 }
  0x34   :  { %v94_v35 = vrot.slane %v93_v29, 1  ;;  %v101_v38 = vrot.slane %v100_v32, 1 }
  0x35   :  { %v78_v33 = vrot.slane %v77_v30, 2  ;;  %v85_v34 = vrot.slane %v84_v31, 2 }
  0x36   :  { %v95_v41 = vadd.f32 %v94_v35, %v93_v29  ;;  %v102_v44 = vadd.f32 %v101_v38, %v100_v32 }
  0x37   :  { %v79_v36 = vadd.f32 %v78_v33, %v77_v30  ;;  %v86_v37 = vadd.f32 %v85_v34, %v84_v31 }
  0x39   :  { %v80_v39 = vrot.slane %v79_v36, 1  ;;  %v87_v40 = vrot.slane %v86_v37, 1 }
  0x3b   :  { %v81_v42 = vadd.f32 %v80_v39, %v79_v36  ;;  %v88_v43 = vadd.f32 %v87_v40, %v86_v37 }
  0x3d   :  { %v104_v45 = vsel %vm103_vm4, %v81_v42, %v88_v43 }
  0x3e   :  { %v106_v47 = vsel %vm105_vm5, %v104_v45, %v95_v41 }
  0x3f   :  { %v108_v48 = vsel %vm107_vm6, %v106_v47, %v102_v44 }
  0x40   :  { %v110_v49 = vadd.f32 %v109_v46, %v108_v48 }
  0x42   :  { %111 = vst [vmem:[#allocation7] sm:$0xf] %v110_v49 }
  0x43   :  { %276 = shalt.err (!%p273_p6)
}
  0x44   :  { %s277_s10 = scalar_lea.hbm %s360_s2, 64 }
  0x45   :  { %p278_p7 = scmp.ne.s32.totalorder %s360_s2, %s277_s10  ;;  %p281_p8 = scmp.lt.u32.totalorder %s277_s10, %s360_s2 }
  0x47   :  { %p283_p9 = pnand %p281_p8, %p278_p7 }
  0x49   :  { %286 = shalt.err (!%p283_p9)
}
  0x4a   :  { %200 = dma.vmem_to_hbm [thread:$0]  %s198_s6, 64, %s360_s2, [#allocation4]  }
  0x4b   :  { %291 = dma.done.wait [#allocation4], 64  }
  0x4c   :  { %292 = vsyncadd [#allocation4], 4294967232 }
  0x4d   :  { %204 = vsyncpa [#allocation3], 1 }
  0x4e   :  { %205 = vsyncpa [#allocation6], 1 }
  0x4f   :  { %206 = vsyncpa [#allocation4], 1 }

</bundles_post_ra>
